<compile_context>
chip_gen: v6e
topology: v6e:2x2x1
jax: 0.10.0
libtpu: 0.0.40
codegen_flags: <defaults>
</compile_context>

<pallas_src>
import functools

import jax
import jax.numpy as jnp
from jax import lax
from jax.experimental import pallas as pl
from jax.experimental.pallas import tpu as pltpu


def _edge_residual_kernel(x_ref, mask_ref, w9_ref, scale1_ref, bias1_ref,
                          w2_ref, scale2_ref, bias2_ref, out_ref, ext_ref,
                          *, W, residual):
    # x_ref:        (B, Cin, H*W)   f32  (NCHW with (H,W) flattened -> lane dense)
    # mask_ref:     (2, H*W)        matmul dtype; [0]=not-left-edge, [1]=not-right-edge
    # w9_ref:       (Cmid, 9*Cin)   conv_exp weights, tap-major / in-channel-minor
    # scale1/bias1: (Cmid, 1)       folded bn1
    # w2_ref:       (Cout, Cmid)    conv_pwl (1x1) weights, transposed
    # scale2/bias2: (Cout, 1)       folded bn2
    # out_ref:      (B, Cout, H*W)  f32
    # ext_ref:      (Cin, H*W + 2*(W+1)) VMEM scratch: flattened image with zero halo
    B, Cin, HW = x_ref.shape
    pad = W + 1
    mm_dtype = ext_ref.dtype

    # Zero the halo once per grid step (the interior is fully overwritten per image).
    ext_ref[...] = jnp.zeros_like(ext_ref)

    w9 = w9_ref[...]
    w2 = w2_ref[...]
    scale1 = scale1_ref[...]
    bias1 = bias1_ref[...]
    scale2 = scale2_ref[...]
    bias2 = bias2_ref[...]
    not_left = mask_ref[0:1, :]      # (1, HW)
    not_right = mask_ref[1:2, :]     # (1, HW)

    for b in range(B):
        x_img = x_ref[b]                                     # (Cin, HW) f32
        ext_ref[:, pad:pad + HW] = x_img.astype(mm_dtype)

        # im2col: the 9 taps of the 3x3 / pad-1 conv are lane-shifted copies of the
        # flattened image.  Vertical out-of-range reads land in the zero halo; reads
        # that wrap across a row boundary are zeroed by the column-edge masks.
        taps = []
        for dy in range(3):
            for dx in range(3):
                t = ext_ref[:, dy * W + dx: dy * W + dx + HW]    # (Cin, HW)
                if dx == 0:
                    t = t * not_left
                elif dx == 2:
                    t = t * not_right
                taps.append(t)
        x9 = jnp.concatenate(taps, axis=0)                   # (9*Cin, HW)

        # conv_exp as a single MXU matmul (K = 9*Cin), f32 accumulate.
        acc = jnp.dot(w9, x9, preferred_element_type=jnp.float32)       # (Cmid, HW)
        # bn1 (folded) + ReLU (act1).  se is Identity.
        h = jnp.maximum(acc * scale1 + bias1, 0.0)
        # conv_pwl (1x1) as a matmul, then bn2 (folded).
        y = jnp.dot(w2, h.astype(mm_dtype), preferred_element_type=jnp.float32)  # (Cout, HW)
        y = y * scale2 + bias2
        if residual:
            y = y + x_img                                    # drop_path_rate == 0.0 -> plain add
        out_ref[b] = y.astype(out_ref.dtype)                 # lane-dense (Cout, 256) store


def _pick_images_per_step(n):
    # Fold batch into each grid step to amortize the ~0.35us/step pipeline overhead,
    # but keep >= 2 grid steps when possible so the "parallel" axis can shard across
    # v7x's two TensorCores.
    target = max(1, n // 2)
    return max(d for d in range(1, n + 1) if n % d == 0 and d <= target)


@functools.partial(jax.jit,
                   static_argnames=("use_bf16_matmul", "images_per_step", "has_residual"))
def edge_residual_forward(x_nchw, w_exp, w_pwl,
                          bn1_gamma, bn1_beta, bn1_mean, bn1_var,
                          bn2_gamma, bn2_beta, bn2_mean, bn2_var,
                          eps=1e-5, *, use_bf16_matmul=True, images_per_step=None,
                          has_residual=True):
    """FusedMBConv forward.  x_nchw: (N, Cin, H, W) f32 -> (N, Cout, H, W)."""
    N, Cin, H, W = x_nchw.shape
    Cmid = w_exp.shape[3]
    Cout = w_pwl.shape[1]
    HW = H * W
    if has_residual and Cin != Cout:
        raise ValueError("has_residual requires in_chs == out_chs")

    if images_per_step is None:
        images_per_step = _pick_images_per_step(N)
    assert N % images_per_step == 0
    grid = (N // images_per_step,)

    mm_dtype = jnp.bfloat16 if use_bf16_matmul else jnp.float32

    # Free contiguous reshape (no transpose / pad / extra HBM traffic).
    x_flat = x_nchw.reshape(N, Cin, HW)

    # Fold eval-mode batchnorms into per-channel scale/bias column vectors.
    s1 = bn1_gamma * lax.rsqrt(bn1_var + eps)
    scale1 = s1.reshape(Cmid, 1)
    bias1 = (bn1_beta - bn1_mean * s1).reshape(Cmid, 1)
    s2 = bn2_gamma * lax.rsqrt(bn2_var + eps)
    scale2 = s2.reshape(Cout, 1)
    bias2 = (bn2_beta - bn2_mean * s2).reshape(Cout, 1)

    # conv_exp HWIO (3,3,Cin,Cmid) -> (Cmid, 9*Cin), tap-major / channel-minor
    # (matches the tap order built inside the kernel).
    w9 = jnp.transpose(w_exp, (3, 0, 1, 2)).reshape(Cmid, 9 * Cin).astype(mm_dtype)
    # conv_pwl (Cmid, Cout) -> (Cout, Cmid) for channel-major matmul.
    w2 = jnp.transpose(w_pwl, (1, 0)).astype(mm_dtype)

    # Column-edge masks: zero taps that would read across a row boundary.
    col = jnp.arange(HW, dtype=jnp.int32) % W
    masks = jnp.stack([col != 0, col != W - 1]).astype(mm_dtype)      # (2, HW)

    kernel = functools.partial(_edge_residual_kernel, W=W, residual=has_residual)
    out_flat = pl.pallas_call(
        kernel,
        out_shape=jax.ShapeDtypeStruct((N, Cout, HW), x_nchw.dtype),
        grid_spec=pltpu.PrefetchScalarGridSpec(
            num_scalar_prefetch=0,
            grid=grid,
            in_specs=[
                pl.BlockSpec((images_per_step, Cin, HW), lambda i: (i, 0, 0)),
                pl.BlockSpec((2, HW), lambda i: (0, 0)),
                pl.BlockSpec((Cmid, 9 * Cin), lambda i: (0, 0)),
                pl.BlockSpec((Cmid, 1), lambda i: (0, 0)),
                pl.BlockSpec((Cmid, 1), lambda i: (0, 0)),
                pl.BlockSpec((Cout, Cmid), lambda i: (0, 0)),
                pl.BlockSpec((Cout, 1), lambda i: (0, 0)),
                pl.BlockSpec((Cout, 1), lambda i: (0, 0)),
            ],
            out_specs=pl.BlockSpec((images_per_step, Cout, HW), lambda i: (i, 0, 0)),
            scratch_shapes=[pltpu.VMEM((Cin, HW + 2 * (W + 1)), mm_dtype)],
        ),
        compiler_params=pltpu.CompilerParams(
            dimension_semantics=("parallel",)),
    )(x_flat, masks, w9, scale1, bias1, w2, scale2, bias2)

    # Free contiguous reshape back to NCHW.
    return out_flat.reshape(N, Cout, H, W)


def _reference_forward(x_nchw, w_exp, w_pwl,
                       bn1_gamma, bn1_beta, bn1_mean, bn1_var,
                       bn2_gamma, bn2_beta, bn2_mean, bn2_var, eps=1e-5):
    """Plain-JAX reference (matches PyTorch eval-mode semantics)."""
    x = jnp.transpose(x_nchw, (0, 2, 3, 1))  # NHWC
    shortcut = x
    h = lax.conv_general_dilated(
        x, w_exp, window_strides=(1, 1), padding=((1, 1), (1, 1)),
        dimension_numbers=("NHWC", "HWIO", "NHWC"))
    h = (h - bn1_mean) * lax.rsqrt(bn1_var + eps) * bn1_gamma + bn1_beta
    h = jnp.maximum(h, 0.0)
    y = lax.conv_general_dilated(
        h, w_pwl[None, None], window_strides=(1, 1), padding="VALID",
        dimension_numbers=("NHWC", "HWIO", "NHWC"))
    y = (y - bn2_mean) * lax.rsqrt(bn2_var + eps) * bn2_gamma + bn2_beta
    y = y + shortcut
    return jnp.transpose(y, (0, 3, 1, 2))


if __name__ == "__main__":
    # Shapes consistent with the module: 3x3 expansion conv (ratio 4), 1x1 pwl conv,
    # stride 1, in_chs == out_chs so has_residual=True, se = Identity.
    N, Cin, H, W = 2, 8, 16, 16
    Cmid, Cout = 32, 8

    key = jax.random.PRNGKey(0)
    k = jax.random.split(key, 12)
    x = jax.random.normal(k[0], (N, Cin, H, W), jnp.float32)
    w_exp = jax.random.normal(k[1], (3, 3, Cin, Cmid), jnp.float32) * 0.1
    w_pwl = jax.random.normal(k[2], (Cmid, Cout), jnp.float32) * 0.1

    bn1_gamma = jax.random.uniform(k[3], (Cmid,), jnp.float32, 0.5, 1.5)
    bn1_beta = jax.random.normal(k[4], (Cmid,), jnp.float32) * 0.1
    bn1_mean = jax.random.normal(k[5], (Cmid,), jnp.float32) * 0.1
    bn1_var = jax.random.uniform(k[6], (Cmid,), jnp.float32, 0.5, 1.5)

    bn2_gamma = jax.random.uniform(k[7], (Cout,), jnp.float32, 0.5, 1.5)
    bn2_beta = jax.random.normal(k[8], (Cout,), jnp.float32) * 0.1
    bn2_mean = jax.random.normal(k[9], (Cout,), jnp.float32) * 0.1
    bn2_var = jax.random.uniform(k[10], (Cout,), jnp.float32, 0.5, 1.5)

    args = (x, w_exp, w_pwl,
            bn1_gamma, bn1_beta, bn1_mean, bn1_var,
            bn2_gamma, bn2_beta, bn2_mean, bn2_var)

    ref = jax.block_until_ready(_reference_forward(*args))

    # Exact path (f32 MXU operands) -- tight tolerance.
    out_f32 = jax.block_until_ready(
        edge_residual_forward(*args, use_bf16_matmul=False))
    assert out_f32.shape == (N, Cout, H, W)
    assert jnp.allclose(out_f32, ref, atol=1e-4, rtol=1e-4), \
        float(jnp.max(jnp.abs(out_f32 - ref)))

    # Fast path (bf16 MXU operands, f32 accumulate) -- bf16-level tolerance.
    out_bf16 = jax.block_until_ready(
        edge_residual_forward(*args, use_bf16_matmul=True))
    assert out_bf16.shape == (N, Cout, H, W)
    assert jnp.allclose(out_bf16, ref, atol=5e-2, rtol=5e-2), \
        float(jnp.max(jnp.abs(out_bf16 - ref)))

    print("KERNEL_OK")
</pallas_src>

<mosaic_0001>
module attributes {stable_mosaic.version = 11 : i64} {
  func.func @_edge_residual_kernel(%arg0: i32, %arg1: memref<1x8x256xf32, #tpu.memory_space<vmem>>, %arg2: memref<2x256xf32, #tpu.memory_space<vmem>>, %arg3: memref<32x72xf32, #tpu.memory_space<vmem>>, %arg4: memref<32x1xf32, #tpu.memory_space<vmem>>, %arg5: memref<32x1xf32, #tpu.memory_space<vmem>>, %arg6: memref<8x32xf32, #tpu.memory_space<vmem>>, %arg7: memref<8x1xf32, #tpu.memory_space<vmem>>, %arg8: memref<8x1xf32, #tpu.memory_space<vmem>>, %arg9: memref<1x8x256xf32, #tpu.memory_space<vmem>>, %arg10: memref<8x290xf32, #tpu.memory_space<vmem>>) attributes {dimension_semantics = [#tpu.dimension_semantics<parallel>], iteration_bounds = array<i64: 2>, scalar_prefetch = 0 : i64, scratch_operands = 1 : i64, tpu.core_type = #tpu.core_type<tc>, window_params = [{transform_indices = @transform_0, window_bounds = array<i64: 1, 8, 256>}, {pipeline_mode = #tpu.pipeline_mode<synchronous>, transform_indices = @transform_1, window_bounds = array<i64: 2, 256>}, {pipeline_mode = #tpu.pipeline_mode<synchronous>, transform_indices = @transform_2, window_bounds = array<i64: 32, 72>}, {pipeline_mode = #tpu.pipeline_mode<synchronous>, transform_indices = @transform_3, window_bounds = array<i64: 32, 1>}, {pipeline_mode = #tpu.pipeline_mode<synchronous>, transform_indices = @transform_4, window_bounds = array<i64: 32, 1>}, {pipeline_mode = #tpu.pipeline_mode<synchronous>, transform_indices = @transform_5, window_bounds = array<i64: 8, 32>}, {pipeline_mode = #tpu.pipeline_mode<synchronous>, transform_indices = @transform_6, window_bounds = array<i64: 8, 1>}, {pipeline_mode = #tpu.pipeline_mode<synchronous>, transform_indices = @transform_7, window_bounds = array<i64: 8, 1>}, {transform_indices = @transform_8, window_bounds = array<i64: 1, 8, 256>}]} {
    %cst = arith.constant 0.000000e+00 : f32
    %0 = vector.broadcast %cst : f32 to vector<8x290xf32>
    %c0 = arith.constant 0 : index
    %c0_0 = arith.constant 0 : index
    %1 = vector.load %arg10[%c0, %c0_0] : memref<8x290xf32, #tpu.memory_space<vmem>>, vector<8x290xf32>
    tpu.vector_store %arg10[%c0, %c0_0], %0 {strides = array<i32>} : memref<8x290xf32, #tpu.memory_space<vmem>>, vector<8x290xf32>,
    %c0_1 = arith.constant 0 : index
    %c0_2 = arith.constant 0 : index
    %2 = vector.load %arg3[%c0_1, %c0_2] : memref<32x72xf32, #tpu.memory_space<vmem>>, vector<32x72xf32>
    %c0_3 = arith.constant 0 : index
    %c0_4 = arith.constant 0 : index
    %3 = vector.load %arg6[%c0_3, %c0_4] : memref<8x32xf32, #tpu.memory_space<vmem>>, vector<8x32xf32>
    %c0_5 = arith.constant 0 : index
    %c0_6 = arith.constant 0 : index
    %4 = vector.load %arg4[%c0_5, %c0_6] : memref<32x1xf32, #tpu.memory_space<vmem>>, vector<32x1xf32>
    %c0_7 = arith.constant 0 : index
    %c0_8 = arith.constant 0 : index
    %5 = vector.load %arg5[%c0_7, %c0_8] : memref<32x1xf32, #tpu.memory_space<vmem>>, vector<32x1xf32>
    %c0_9 = arith.constant 0 : index
    %c0_10 = arith.constant 0 : index
    %6 = vector.load %arg7[%c0_9, %c0_10] : memref<8x1xf32, #tpu.memory_space<vmem>>, vector<8x1xf32>
    %c0_11 = arith.constant 0 : index
    %c0_12 = arith.constant 0 : index
    %7 = vector.load %arg8[%c0_11, %c0_12] : memref<8x1xf32, #tpu.memory_space<vmem>>, vector<8x1xf32>
    %c0_13 = arith.constant 0 : index
    %c0_14 = arith.constant 0 : index
    %8 = vector.load %arg2[%c0_13, %c0_14] : memref<2x256xf32, #tpu.memory_space<vmem>>, vector<1x256xf32>
    %c1 = arith.constant 1 : index
    %c0_15 = arith.constant 0 : index
    %9 = vector.load %arg2[%c1, %c0_15] : memref<2x256xf32, #tpu.memory_space<vmem>>, vector<1x256xf32>
    %c0_16 = arith.constant 0 : index
    %c0_17 = arith.constant 0 : index
    %c0_18 = arith.constant 0 : index
    %10 = vector.load %arg1[%c0_16, %c0_17, %c0_18] : memref<1x8x256xf32, #tpu.memory_space<vmem>>, vector<1x8x256xf32>
    %11 = vector.shape_cast %10 : vector<1x8x256xf32> to vector<8x256xf32>
    %c0_19 = arith.constant 0 : index
    %c17 = arith.constant 17 : index
    %12 = vector.load %arg10[%c0_19, %c17] : memref<8x290xf32, #tpu.memory_space<vmem>>, vector<8x256xf32>
    tpu.vector_store %arg10[%c0_19, %c17], %11 {strides = array<i32>} : memref<8x290xf32, #tpu.memory_space<vmem>>, vector<8x256xf32>,
    %c0_20 = arith.constant 0 : index
    %c0_21 = arith.constant 0 : index
    %13 = vector.load %arg10[%c0_20, %c0_21] : memref<8x290xf32, #tpu.memory_space<vmem>>, vector<8x256xf32>
    %14 = vector.broadcast %8 : vector<1x256xf32> to vector<8x256xf32>
    %15 = arith.mulf %13, %14 : vector<8x256xf32>
    %c0_22 = arith.constant 0 : index
    %c1_23 = arith.constant 1 : index
    %16 = vector.load %arg10[%c0_22, %c1_23] : memref<8x290xf32, #tpu.memory_space<vmem>>, vector<8x256xf32>
    %c0_24 = arith.constant 0 : index
    %c2 = arith.constant 2 : index
    %17 = vector.load %arg10[%c0_24, %c2] : memref<8x290xf32, #tpu.memory_space<vmem>>, vector<8x256xf32>
    %18 = vector.broadcast %9 : vector<1x256xf32> to vector<8x256xf32>
    %19 = arith.mulf %17, %18 : vector<8x256xf32>
    %c0_25 = arith.constant 0 : index
    %c16 = arith.constant 16 : index
    %20 = vector.load %arg10[%c0_25, %c16] : memref<8x290xf32, #tpu.memory_space<vmem>>, vector<8x256xf32>
    %21 = vector.broadcast %8 : vector<1x256xf32> to vector<8x256xf32>
    %22 = arith.mulf %20, %21 : vector<8x256xf32>
    %c0_26 = arith.constant 0 : index
    %c17_27 = arith.constant 17 : index
    %23 = vector.load %arg10[%c0_26, %c17_27] : memref<8x290xf32, #tpu.memory_space<vmem>>, vector<8x256xf32>
    %c0_28 = arith.constant 0 : index
    %c18 = arith.constant 18 : index
    %24 = vector.load %arg10[%c0_28, %c18] : memref<8x290xf32, #tpu.memory_space<vmem>>, vector<8x256xf32>
    %25 = vector.broadcast %9 : vector<1x256xf32> to vector<8x256xf32>
    %26 = arith.mulf %24, %25 : vector<8x256xf32>
    %c0_29 = arith.constant 0 : index
    %c32 = arith.constant 32 : index
    %27 = vector.load %arg10[%c0_29, %c32] : memref<8x290xf32, #tpu.memory_space<vmem>>, vector<8x256xf32>
    %28 = vector.broadcast %8 : vector<1x256xf32> to vector<8x256xf32>
    %29 = arith.mulf %27, %28 : vector<8x256xf32>
    %c0_30 = arith.constant 0 : index
    %c33 = arith.constant 33 : index
    %30 = vector.load %arg10[%c0_30, %c33] : memref<8x290xf32, #tpu.memory_space<vmem>>, vector<8x256xf32>
    %c0_31 = arith.constant 0 : index
    %c34 = arith.constant 34 : index
    %31 = vector.load %arg10[%c0_31, %c34] : memref<8x290xf32, #tpu.memory_space<vmem>>, vector<8x256xf32>
    %32 = vector.broadcast %9 : vector<1x256xf32> to vector<8x256xf32>
    %33 = arith.mulf %31, %32 : vector<8x256xf32>
    %34 = tpu.concatenate %15, %16, %19, %22, %23, %26, %29, %30, %33 in 0 : vector<8x256xf32>, vector<8x256xf32>, vector<8x256xf32>, vector<8x256xf32>, vector<8x256xf32>, vector<8x256xf32>, vector<8x256xf32>, vector<8x256xf32>, vector<8x256xf32> -> vector<72x256xf32>
    %cst_32 = arith.constant dense<0.000000e+00> : vector<32x256xf32>
    %35 = tpu.matmul %2, %34, %cst_32 {dimension_numbers = #tpu.dot_dimension_numbers<[1], [0], [0], [1], [0, 0, 1, 1], [], []>} : vector<32x72xf32>, vector<72x256xf32>, vector<32x256xf32> -> vector<32x256xf32>
    %36 = vector.broadcast %4 : vector<32x1xf32> to vector<32x256xf32>
    %37 = arith.mulf %35, %36 : vector<32x256xf32>
    %38 = vector.broadcast %5 : vector<32x1xf32> to vector<32x256xf32>
    %39 = arith.addf %37, %38 : vector<32x256xf32>
    %cst_33 = arith.constant 0.000000e+00 : f32
    %40 = vector.broadcast %cst_33 : f32 to vector<32x256xf32>
    %41 = arith.maximumf %39, %40 : vector<32x256xf32>
    %cst_34 = arith.constant dense<0.000000e+00> : vector<8x256xf32>
    %42 = tpu.matmul %3, %41, %cst_34 {dimension_numbers = #tpu.dot_dimension_numbers<[1], [0], [0], [1], [0, 0, 1, 1], [], []>} : vector<8x32xf32>, vector<32x256xf32>, vector<8x256xf32> -> vector<8x256xf32>
    %43 = vector.broadcast %6 : vector<8x1xf32> to vector<8x256xf32>
    %44 = arith.mulf %42, %43 : vector<8x256xf32>
    %45 = vector.broadcast %7 : vector<8x1xf32> to vector<8x256xf32>
    %46 = arith.addf %44, %45 : vector<8x256xf32>
    %47 = arith.addf %46, %11 : vector<8x256xf32>
    %c0_35 = arith.constant 0 : index
    %c0_36 = arith.constant 0 : index
    %c0_37 = arith.constant 0 : index
    %48 = vector.load %arg9[%c0_35, %c0_36, %c0_37] : memref<1x8x256xf32, #tpu.memory_space<vmem>>, vector<1x8x256xf32>
    %49 = vector.shape_cast %48 : vector<1x8x256xf32> to vector<8x256xf32>
    %50 = vector.shape_cast %47 : vector<8x256xf32> to vector<1x8x256xf32>
    tpu.vector_store %arg9[%c0_35, %c0_36, %c0_37], %50 {strides = array<i32>} : memref<1x8x256xf32, #tpu.memory_space<vmem>>, vector<1x8x256xf32>,
    return
  }
  func.func @transform_0(%arg0: i32) -> (i32, i32, i32) {
    %c0_i32 = arith.constant 0 : i32
    %c0_i32_0 = arith.constant 0 : i32
    %c0_i32_1 = arith.constant 0 : i32
    return %arg0, %c0_i32, %c0_i32_0 : i32, i32, i32
  }
  func.func @transform_1(%arg0: i32) -> (i32, i32) {
    %c0_i32 = arith.constant 0 : i32
    %c0_i32_0 = arith.constant 0 : i32
    %c0_i32_1 = arith.constant 0 : i32
    return %c0_i32, %c0_i32_0 : i32, i32
  }
  func.func @transform_2(%arg0: i32) -> (i32, i32) {
    %c0_i32 = arith.constant 0 : i32
    %c0_i32_0 = arith.constant 0 : i32
    %c0_i32_1 = arith.constant 0 : i32
    return %c0_i32, %c0_i32_0 : i32, i32
  }
  func.func @transform_3(%arg0: i32) -> (i32, i32) {
    %c0_i32 = arith.constant 0 : i32
    %c0_i32_0 = arith.constant 0 : i32
    %c0_i32_1 = arith.constant 0 : i32
    return %c0_i32, %c0_i32_0 : i32, i32
  }
  func.func @transform_4(%arg0: i32) -> (i32, i32) {
    %c0_i32 = arith.constant 0 : i32
    %c0_i32_0 = arith.constant 0 : i32
    %c0_i32_1 = arith.constant 0 : i32
    return %c0_i32, %c0_i32_0 : i32, i32
  }
  func.func @transform_5(%arg0: i32) -> (i32, i32) {
    %c0_i32 = arith.constant 0 : i32
    %c0_i32_0 = arith.constant 0 : i32
    %c0_i32_1 = arith.constant 0 : i32
    return %c0_i32, %c0_i32_0 : i32, i32
  }
  func.func @transform_6(%arg0: i32) -> (i32, i32) {
    %c0_i32 = arith.constant 0 : i32
    %c0_i32_0 = arith.constant 0 : i32
    %c0_i32_1 = arith.constant 0 : i32
    return %c0_i32, %c0_i32_0 : i32, i32
  }
  func.func @transform_7(%arg0: i32) -> (i32, i32) {
    %c0_i32 = arith.constant 0 : i32
    %c0_i32_0 = arith.constant 0 : i32
    %c0_i32_1 = arith.constant 0 : i32
    return %c0_i32, %c0_i32_0 : i32, i32
  }
  func.func @transform_8(%arg0: i32) -> (i32, i32, i32) {
    %c0_i32 = arith.constant 0 : i32
    %c0_i32_0 = arith.constant 0 : i32
    %c0_i32_1 = arith.constant 0 : i32
    return %arg0, %c0_i32, %c0_i32_0 : i32, i32, i32
  }
}

</mosaic_0001>

<bundles_post_ra>
// kernel: edge_residual_forward.1
= control target key start
LH: loop header
LB: loop body
LE: loop exit
PB: predicated region body
PF: predicated region fallthrough
CT: control target
= control target key end

     0   :  { %s962_s27 = smov 0   ;;  %s1094_s0 = inlined_call_operand.vmem [shape: f32[2,8,256], index: 0, kind: input, shape index: {}]   ;;  %s1095_s1 = inlined_call_operand.vmem [shape: f32[2,256], index: 1, kind: input, shape index: {}]   ;;  %s1096_s2 = inlined_call_operand.vmem [shape: f32[32,72], index: 2, kind: input, shape index: {}]   ;;  %s1097_s3 = inlined_call_operand.vmem [shape: f32[32,1], index: 3, kind: input, shape index: {}]   ;;  %s1098_s4 = inlined_call_operand.vmem [shape: f32[32,1], index: 4, kind: input, shape index: {}]   ;;  %s1099_s5 = inlined_call_operand.vmem [shape: f32[8,32], index: 5, kind: input, shape index: {}]   ;;  %s1100_s6 = inlined_call_operand.vmem [shape: f32[8,1], index: 6, kind: input, shape index: {}]   ;;  %s1101_s7 = inlined_call_operand.vmem [shape: f32[8,1], index: 7, kind: input, shape index: {}]   ;;  %s1102_s8 = inlined_call_operand.vmem [shape: f32[2,8,256], index: 8, kind: output, shape index: {}]  }
   0x1 LB: > { %s848_s28 = sadd.s32 4294967295, %s899_s27   ;;  %p852_p0 = scmp.ge.s32.totalorder %s899_s27, 1  ;;  %s899_s27 = sphi %s962_s27, %s18_s27  }
   0x2   : > { %p262_p1 = scmp.lt.s32.totalorder %s899_s27, 3 }
   0x4   : > { %p263_p2 = pnand %p852_p0, %p262_p1 }
   0x5   : > { %p296_p3 = scmp.lt.s32.totalorder (!%p263_p2), %s848_s28, 1  ;;  %s902_s13 = smov (!%p263_p2), 17  }
   0x6   : > { %266 = sbr.rel (%p263_p2) target bundleno = 729 (0x2d9), region = 52  ;;  %s903_s14 = smov (!%p263_p2), 34  }
   0x7   : > { %s904_s17 = smov (!%p263_p2), 32   ;;  %s905_s18 = smov (!%p263_p2), 18  }
   0x8   : > { %s906_s19 = smov (!%p263_p2), 16   ;;  %s907_s20 = smov (!%p263_p2), 2  }
   0x9   : > { %s908_s21 = smov (!%p263_p2), 95   ;;  %s909_s22 = smov (!%p263_p2), 111  }
   0xa   : > { %s910_s23 = smov (!%p263_p2), 94   ;;  %s911_s24 = smov (!%p263_p2), 96  }
   0xb   : > { %v348_v0 = vlaneseq  ;;  %v901_v1 = vmov 0.0   ;;  %s1104_s28 = smov (!%p296_p3, %s848_s28), 1  ;;  %vm308_vm0 = vcmask 277504   ;;  %v857_v3 = vld [vmem:[%s1095_s1 + $0x1] ss:$2 sm:$0x3] }
   0xc   : > { %306 = vst [vmem:[#allocation2] sm:$0xff] %v901_v1  ;;  %612 = vmatprep.mubr.f32.mxu0 %v901_v1  ;;  %768 = vmatprep.mubr.f32.mxu1 %v901_v1  ;;  %309 = vst.msk [vmem:[#allocation2 + $0x10] sm:$0xff] %vm308_vm0, %v901_v1  ;;  %s865_s9 = sshll.u32 %s1104_s28, 4  ;;  %v325_v10 = vld [vmem:[%s1095_s1] ss:$2 sm:$0x3] }
   0xd   : > { %v349_v2 = vshrl.u32 %v348_v0, 7  ;;  %s300_s12 = scalar_lea.vmem %s1094_s0, %s865_s9  ;;  %vm341_vm1 = vcmask 1047688   ;;  %vm336_vm2 = vcmask 138240   ;;  %s912_s25 = smov 110   ;;  %vm398_vm3 = vcmask 146432   ;;  %v318_v48 = vld [vmem:[%s1097_s3 + $0x18] sm:$0xff] }
   0xe   : > { %v986_v6 = vld [vmem:[%s300_s12] sm:$0xff]  ;;  %v989_v8 = vld [vmem:[%s300_s12 + $0x8] sm:$0xff]  ;;  %s913_s26 = smov 112   ;;  %vm410_vm4 = vcmask 261120   ;;  %vm386_vm5 = vcmask 130048   ;;  %s914_s29 = smov 126  }
   0xf   : > { %v350_v4 = vsub.s32 0, %v349_v2  ;;  %v354_v5 = vsub.s32 1, %v349_v2  ;;  %332 = vrot.lane.b32.xlu0 %v986_v6, %s902_s13  ;;  %vm374_vm6 = vcmask 15360   ;;  %s915_s30 = smov 127   ;;  %v317_v49 = vld [vmem:[%s1097_s3 + $0x10] sm:$0xff]  ;;  %v916_v50 = vmov 0  }
  0x10   : > { %891 = vset.pattern.permute.xlu0 %v916_v50  ;;  %892 = vset.pattern.permute.xlu1 %v916_v50  ;;  %v316_v51 = vld [vmem:[%s1097_s3 + $0x8] sm:$0xff]  ;;  %v322_v52 = vld [vmem:[%s1098_s4 + $0x18] sm:$0xff]  ;;  %v315_v53 = vld [vmem:[%s1097_s3] sm:$0xff]  ;;  %vm530_vm7 = vcmask 769024   ;;  %vm516_vm8 = vcmask 777216   ;;  %vm505_vm9 = vcmask 785408  }
  0x11   : > { %v365_v7 = vrot.slane %v857_v3, %v350_v4  ;;  %v369_v9 = vrot.slane %v857_v3, %v354_v5  ;;  %v995_v11 = vrot.slane %v325_v10, %v350_v4  ;;  %v997_v12 = vrot.slane %v325_v10, %v354_v5  ;;  %v321_v54 = vld [vmem:[%s1098_s4 + $0x10] sm:$0xff]  ;;  %v319_v55 = vld [vmem:[%s1098_s4] sm:$0xff]  ;;  %v320_v56 = vld [vmem:[%s1098_s4 + $0x8] sm:$0xff] }
  0x12   : > { %v323_v57 = vld [vmem:[%s1100_s6] sm:$0xff]  ;;  %vm491_vm10 = vcmask 900096   ;;  %vm477_vm11 = vcmask 908288   ;;  %vm466_vm12 = vcmask 916480   ;;  %vm452_vm13 = vcmask 1031168  }
  0x13   : > { %418 = vrot.lane.b32.xlu1 %v365_v7, %s903_s14  ;;  %334 = vrot.lane.b32.xlu0 %v989_v8, %s902_s13  ;;  %v324_v58 = vld [vmem:[%s1101_s7] sm:$0xff]  ;;  %vm438_vm14 = vcmask 1039360   ;;  %vm535_vm15 = vcmask 588800  }
  0x17   : > { %420 = vrot.lane.b32.xlu1 %v369_v9, %s903_s14  ;;  %406 = vrot.lane.b32.xlu0 %v995_v11, %s904_s17 }
  0x1b   : > { %408 = vrot.lane.b32.xlu1 %v997_v12, %s904_s17  ;;  %394 = vrot.lane.b32.xlu0 %v365_v7, %s905_s18 }
  0x1f   : > { %396 = vrot.lane.b32.xlu1 %v369_v9, %s905_s18  ;;  %382 = vrot.lane.b32.xlu0 %v995_v11, %s906_s19 }
  0x23   : > { %384 = vrot.lane.b32.xlu1 %v997_v12, %s906_s19  ;;  %370 = vrot.lane.b32.xlu0 %v365_v7, %s907_s20 }
  0x27   : > { %372 = vrot.lane.b32.xlu1 %v369_v9, %s907_s20 }
  0x81   : > { %v333_v13 = vpop.permute.xlu0 %332 }
  0x82   : > { %342 = vst.msk [vmem:[#allocation2] sm:$0xff] %vm341_vm1, %v333_v13 }
  0x85   : > { %v419_v14 = vpop.permute.xlu1 %418  ;;  %v335_v15 = vpop.permute.xlu0 %334 }
  0x86   : > { %v1003_v16 = vsel %vm336_vm2, %v333_v13, %v335_v15  ;;  %344 = vst.msk [vmem:[#allocation2 + $0x10] sm:$0xff] %vm336_vm2, %v335_v15 }
  0x89   : > { %v1005_v17 = vld [vmem:[#allocation2] sm:$0xff]  ;;  %v421_v18 = vpop.permute.xlu1 %420  ;;  %v407_v21 = vpop.permute.xlu0 %406 }
  0x8a   : > { %510 = vrot.lane.b32.xlu1 %v1005_v17, %s908_s21  ;;  %v426_v25 = vmul.f32 %v419_v14, %v1005_v17  ;;  %v415_v28 = vmul.f32 %v407_v21, %v1005_v17  ;;  %v422_v36 = vsel %vm308_vm0, %v419_v14, %v421_v18 }
  0x8b   : > { %v427_v38 = vmul.f32 %v422_v36, %v1003_v16 }
  0x8d   : > { %v360_v19 = vld [vmem:[#allocation2 + $0x10] sm:$0xff]  ;;  %v409_v20 = vpop.permute.xlu1 %408  ;;  %v395_v24 = vpop.permute.xlu0 %394 }
  0x8e   : > { %475 = vrot.lane.b32.xlu1 %v360_v19, %s909_s22  ;;  %514 = vrot.lane.b32.xlu0 %v360_v19, %s908_s21  ;;  %v428_v22 = vmul.f32 %v421_v18, %v360_v19  ;;  %v417_v26 = vmul.f32 %v409_v20, %v360_v19  ;;  %v403_v29 = vmul.f32 %v395_v24, %v1005_v17 }
  0x8f   : > { %v411_v40 = vsel %vm410_vm4, %v407_v21, %v409_v20 }
  0x90   : > { %v416_v42 = vmul.f32 %v411_v40, %v1003_v16 }
  0x91   : > { %v397_v23 = vpop.permute.xlu1 %396  ;;  %v383_v30 = vpop.permute.xlu0 %382 }
  0x92   : > { %471 = vrot.lane.b32.xlu0 %v1005_v17, %s909_s22  ;;  %512 = vrot.lane.b32.xlu1 %v1003_v16, %s908_s21  ;;  %v405_v31 = vmul.f32 %v397_v23, %v360_v19  ;;  %v391_v32 = vmul.f32 %v383_v30, %v1005_v17  ;;  %v399_v37 = vsel %vm398_vm3, %v395_v24, %v397_v23 }
  0x93   : > { %v404_v39 = vmul.f32 %v399_v37, %v1003_v16 }
  0x95   : > { %v385_v27 = vpop.permute.xlu1 %384  ;;  %v371_v44 = vpop.permute.xlu0 %370 }
  0x96   : > { %473 = vrot.lane.b32.xlu0 %v1003_v16, %s909_s22  ;;  %528 = vrot.lane.b32.xlu1 %v428_v22, %s910_s23  ;;  %v393_v34 = vmul.f32 %v385_v27, %v360_v19  ;;  %v387_v41 = vsel %vm386_vm5, %v383_v30, %v385_v27  ;;  %v379_v45 = vmul.f32 %v371_v44, %v1005_v17 }
  0x97   : > { %v392_v43 = vmul.f32 %v387_v41, %v1003_v16 }
  0x99   : > { %v373_v33 = vpop.permute.xlu1 %372 }
  0x9a   : > { %524 = vrot.lane.b32.xlu0 %v426_v25, %s910_s23  ;;  %503 = vrot.lane.b32.xlu1 %v417_v26, %s911_s24  ;;  %v381_v35 = vmul.f32 %v373_v33, %v360_v19  ;;  %v375_v46 = vsel %vm374_vm6, %v371_v44, %v373_v33  ;;  %v310_v44 = vld [vmem:[%s1096_s2] sm:$0xff] }
  0x9b   : > { %v380_v47 = vmul.f32 %v375_v46, %v1003_v16 }
  0x9e   : > { %499 = vrot.lane.b32.xlu0 %v415_v28, %s911_s24  ;;  %485 = vrot.lane.b32.xlu1 %v403_v29, %s912_s25 }
  0xa2   : > { %489 = vrot.lane.b32.xlu0 %v405_v31, %s912_s25  ;;  %460 = vrot.lane.b32.xlu1 %v391_v32, %s913_s26 }
  0xa6   : > { %464 = vrot.lane.b32.xlu0 %v393_v34, %s913_s26  ;;  %450 = vrot.lane.b32.xlu1 %v381_v35, %s914_s29 }
  0xaa   : > { %526 = vrot.lane.b32.xlu0 %v427_v38, %s910_s23  ;;  %487 = vrot.lane.b32.xlu1 %v404_v39, %s912_s25  ;;  %s305_s23 = scalar_lea.vmem %s1102_s8, %s865_s9 }
  0xae   : > { %501 = vrot.lane.b32.xlu0 %v416_v42, %s911_s24  ;;  %462 = vrot.lane.b32.xlu1 %v392_v43, %s913_s26  ;;  %v359_v42 = vmul.f32 %v997_v12, %v1003_v16  ;;  %v358_v43 = vmul.f32 %v995_v11, %v1005_v17  ;;  %v312_v11 = vld [vmem:[%s1096_s2 + $0x10] sm:$0xff]  ;;  %v313_v12 = vld [vmem:[%s1096_s2 + $0x18] sm:$0xff] }
  0xb2   : > { %434 = vrot.lane.b32.xlu1 %v1003_v16, %s915_s30  ;;  %446 = vrot.lane.b32.xlu0 %v379_v45, %s914_s29  ;;  %v311_v45 = vld [vmem:[%s1096_s2 + $0x8] sm:$0xff] }
  0xb6   : > { %432 = vrot.lane.b32.xlu1 %v1005_v17, %s915_s30  ;;  %448 = vrot.lane.b32.xlu0 %v380_v47, %s914_s29 }
  0xba   : > { %436 = vrot.lane.b32.xlu0 %v360_v19, %s915_s30  ;;  %649 = vperm.xlu1 %892, %v317_v49  }
  0xbe   : > { %654 = vperm.xlu0 %891, %v318_v48   ;;  %682 = vperm.xlu1 %892, %v322_v52  }
  0xc2   : > { %644 = vperm.xlu0 %891, %v316_v51   ;;  %677 = vperm.xlu1 %892, %v321_v54  }
  0xc6   : > { %639 = vperm.xlu0 %891, %v315_v53   ;;  %672 = vperm.xlu1 %892, %v320_v56  }
  0xca   : > { %667 = vperm.xlu0 %891, %v319_v55   ;;  %777 = vperm.xlu1 %892, %v323_v57  }
  0xce   : > { %784 = vperm.xlu0 %891, %v324_v58  }
  0xfc   : > { %v511_v59 = vpop.permute.xlu1 %510 }
 0x100   : > { %v476_v60 = vpop.permute.xlu1 %475  ;;  %v515_v61 = vpop.permute.xlu0 %514 }
 0x104   : > { %v513_v62 = vpop.permute.xlu1 %512  ;;  %v472_v63 = vpop.permute.xlu0 %471 }
 0x105   : > { %v518_v21 = vsel %vm516_vm8, %v513_v62, %v515_v61  ;;  %v517_v24 = vsel %vm516_vm8, %v511_v59, %v513_v62 }
 0x108   : > { %v529_v0 = vpop.permute.xlu1 %528  ;;  %v474_v2 = vpop.permute.xlu0 %473 }
 0x109   : > { %v479_v31 = vsel %vm477_vm11, %v474_v2, %v476_v60  ;;  %v478_v32 = vsel %vm477_vm11, %v472_v63, %v474_v2 }
 0x10c   : > { %v504_v3 = vpop.permute.xlu1 %503  ;;  %v525_v4 = vpop.permute.xlu0 %524 }
 0x110   : > { %v486_v5 = vpop.permute.xlu1 %485  ;;  %v500_v7 = vpop.permute.xlu0 %499 }
 0x114   : > { %v461_v9 = vpop.permute.xlu1 %460  ;;  %v490_v10 = vpop.permute.xlu0 %489 }
 0x118   : > { %v451_v13 = vpop.permute.xlu1 %450  ;;  %v465_v14 = vpop.permute.xlu0 %464 }
 0x11c   : > { %v488_v15 = vpop.permute.xlu1 %487  ;;  %v527_v18 = vpop.permute.xlu0 %526 }
 0x11d   : > { %v532_v19 = vsel %vm530_vm7, %v527_v18, %v529_v0  ;;  %v531_v20 = vsel %vm530_vm7, %v525_v4, %v527_v18  ;;  %v493_v27 = vsel %vm491_vm10, %v488_v15, %v490_v10  ;;  %v492_v29 = vsel %vm491_vm10, %v486_v5, %v488_v15 }
 0x11e   : > { %562 = vmatprep.subr.mxu0 %v532_v19 }
 0x11f   : > { %563 = vmatpush1.msra.mxu0 %v531_v20 }
 0x120   : > { %v463_v22 = vpop.permute.xlu1 %462  ;;  %564 = vmatprep.subr.mxu0 %v518_v21  ;;  %v502_v23 = vpop.permute.xlu0 %501 }
 0x121   : > { %565 = vmatpush1.msra.mxu0 %v517_v24  ;;  %v507_v25 = vsel %vm505_vm9, %v502_v23, %v504_v3  ;;  %v506_v26 = vsel %vm505_vm9, %v500_v7, %v502_v23  ;;  %v468_v33 = vsel %vm466_vm12, %v463_v22, %v465_v14  ;;  %v467_v35 = vsel %vm466_vm12, %v461_v9, %v463_v22 }
 0x122   : > { %566 = vmatprep.subr.mxu0 %v507_v25 }
 0x123   : > { %567 = vmatpush1.msra.mxu0 %v506_v26  ;;  %v314_v26 = vld [vmem:[%s1099_s5] sm:$0xff] }
 0x124   : > { %568 = vmatprep.subr.mxu0 %v493_v27  ;;  %v447_v28 = vpop.permute.xlu0 %446  ;;  %v435_v30 = vpop.permute.xlu1 %434 }
 0x125   : > { %569 = vmatpush1.msra.mxu0 %v492_v29 }
 0x126   : > { %570 = vmatprep.subr.mxu0 %v479_v31 }
 0x127   : > { %571 = vmatpush1.msra.mxu0 %v478_v32 }
 0x128   : > { %572 = vmatprep.subr.mxu0 %v468_v33  ;;  %v449_v34 = vpop.permute.xlu0 %448  ;;  %v433_v38 = vpop.permute.xlu1 %432 }
 0x129   : > { %573 = vmatpush1.msra.mxu0 %v467_v35  ;;  %v454_v36 = vsel %vm452_vm13, %v449_v34, %v451_v13  ;;  %v453_v37 = vsel %vm452_vm13, %v447_v28, %v449_v34  ;;  %v439_v41 = vsel %vm438_vm14, %v433_v38, %v435_v30 }
 0x12a   : > { %574 = vmatprep.subr.mxu0 %v454_v36 }
 0x12b   : > { %575 = vmatpush1.msra.mxu0 %v453_v37 }
 0x12c   : > { %v437_v39 = vpop.permute.xlu0 %436 }
 0x12d   : > { %v440_v40 = vsel %vm438_vm14, %v435_v30, %v437_v39 }
 0x12e   : > { %576 = vmatprep.subr.mxu0 %v440_v40 }
 0x12f   : > { %577 = vmatpush1.msra.mxu0 %v439_v41 }
 0x130   : > { %578 = vmatprep.subr.mxu0 %v359_v42 }
 0x131   : > { %579 = vmatpush1.msra.mxu0 %v358_v43 }
 0x132   : > { %858 = vmatmul.mubr.msk.f32.vlgmr.msra.gmra.mxu0 %vm535_vm15, %v310_v44 }
 0x133   : > { %618 = vmatprep.mubr.f32.mxu0 %v901_v1 }
 0x135   : > { %v650_v16 = vpop.permute.xlu1 %649 }
 0x136   : > { %859 = vmatmul.mubr.msk.f32.gmra.mxu0 %vm535_vm15, %v311_v45 }
 0x137   : > { %624 = vmatprep.mubr.f32.mxu0 %v901_v1 }
 0x139   : > { %v655_v46 = vpop.permute.xlu0 %654  ;;  %v683_v49 = vpop.permute.xlu1 %682 }
 0x13a   : > { %860 = vmatmul.mubr.msk.f32.gmra.mxu0 %vm535_vm15, %v312_v11 }
 0x13b   : > { %630 = vmatprep.mubr.f32.mxu0 %v901_v1 }
 0x13d   : > { %v645_v51 = vpop.permute.xlu0 %644  ;;  %v678_v54 = vpop.permute.xlu1 %677 }
 0x13e   : > { %861 = vmatmul.mubr.msk.f32.gmra.mxu0 %vm535_vm15, %v313_v12 }
 0x141   : > { %v640_v56 = vpop.permute.xlu0 %639  ;;  %v673_v5 = vpop.permute.xlu1 %672 }
 0x145   : > { %v668_v9 = vpop.permute.xlu0 %667  ;;  %v778_v27 = vpop.permute.xlu1 %777 }
 0x149   : > { %v785_v30 = vpop.permute.xlu0 %784 }
 0x1f2   : > { %v614_v17 = vpop.f32.mrf.mxu0 }
 0x1f3   : > { %v657_v4 = vmul.f32 %v640_v56, %v614_v17 }
 0x1f4   : > { %v616_v47 = vpop.f32.mrf.mxu0 }
 0x1f5   : > { %v658_v0 = vmul.f32 %v640_v56, %v616_v47  ;;  %v685_v20 = vadd.f32 %v668_v9, %v657_v4 }
 0x1f6   : > { %v620_v48 = vpop.f32.mrf.mxu0 }
 0x1f7   : > { %v659_v62 = vmul.f32 %v645_v51, %v620_v48  ;;  %v686_v18 = vadd.f32 %v668_v9, %v658_v0  ;;  %v693_v25 = vmax.f32 %v685_v20, 0.0 }
 0x1f8   : > { %v622_v50 = vpop.f32.mrf.mxu0 }
 0x1f9   : > { %v660_v60 = vmul.f32 %v645_v51, %v622_v50  ;;  %v687_v14 = vadd.f32 %v673_v5, %v659_v62  ;;  %v694_v24 = vmax.f32 %v686_v18, 0.0 }
 0x1fa   : > { %v626_v52 = vpop.f32.mrf.mxu0 }
 0x1fb   : > { %v661_v58 = vmul.f32 %v650_v16, %v626_v52  ;;  %v688_v10 = vadd.f32 %v673_v5, %v660_v60  ;;  %v695_v23 = vmax.f32 %v687_v14, 0.0 }
 0x1fc   : > { %v628_v53 = vpop.f32.mrf.mxu0 }
 0x1fd   : > { %v662_v57 = vmul.f32 %v650_v16, %v628_v53  ;;  %v689_v7 = vadd.f32 %v678_v54, %v661_v58  ;;  %v696_v22 = vmax.f32 %v688_v10, 0.0 }
 0x1fe   : > { %v632_v55 = vpop.f32.mrf.mxu0 }
 0x1ff   : > { %v663_v1 = vmul.f32 %v655_v46, %v632_v55  ;;  %v690_v2 = vadd.f32 %v678_v54, %v662_v57  ;;  %v697_v21 = vmax.f32 %v689_v7, 0.0 }
 0x200   : > { %v634_v59 = vpop.f32.mrf.mxu0 }
 0x201   : > { %v664_v61 = vmul.f32 %v655_v46, %v634_v59  ;;  %v691_v63 = vadd.f32 %v683_v49, %v663_v1  ;;  %v698_v19 = vmax.f32 %v690_v2, 0.0 }
 0x203   : > { %v692_v3 = vadd.f32 %v683_v49, %v664_v61  ;;  %v699_v15 = vmax.f32 %v691_v63, 0.0 }
 0x205   : > { %v700_v13 = vmax.f32 %v692_v3, 0.0 }
 0x207   : > { %728 = vmatprep.subr.mxu1 %v700_v13 }
 0x208   : > { %729 = vmatpush1.msra.mxu1 %v699_v15 }
 0x209   : > { %730 = vmatprep.subr.mxu1 %v698_v19 }
 0x20a   : > { %731 = vmatpush1.msra.mxu1 %v697_v21 }
 0x20b   : > { %732 = vmatprep.subr.mxu1 %v696_v22 }
 0x20c   : > { %733 = vmatpush1.msra.mxu1 %v695_v23 }
 0x20d   : > { %734 = vmatprep.subr.mxu1 %v694_v24 }
 0x20e   : > { %735 = vmatpush1.msra.mxu1 %v693_v25 }
 0x20f   : > { %862 = vmatmul.mubr.msk.f32.vlgmr.msra.gmra.mxu1 %vm410_vm4, %v314_v26 }
 0x2cf   : > { %v770_v28 = vpop.f32.mrf.mxu1 }
 0x2d0   : > { %v780_v29 = vmul.f32 %v778_v27, %v770_v28 }
 0x2d1   : > { %v772_v31 = vpop.f32.mrf.mxu1 }
 0x2d2   : > { %v787_v32 = vadd.f32 %v785_v30, %v780_v29  ;;  %v781_v33 = vmul.f32 %v778_v27, %v772_v31 }
 0x2d4   : > { %v789_v34 = vadd.f32 %v787_v32, %v986_v6  ;;  %v788_v35 = vadd.f32 %v785_v30, %v781_v33 }
 0x2d6   : > { %791 = vst [vmem:[%s305_s23] sm:$0xff] %v789_v34  ;;  %v790_v36 = vadd.f32 %v788_v35, %v989_v8 }
 0x2d8   : > { %792 = vst [vmem:[%s305_s23 + $0x8] sm:$0xff] %v790_v36 }
 0x2d9 PF: > { %s18_s27 = sadd.s32 1, %s899_s27  }
 0x2da   : > { %p15_p4 = scmp.ge.s32.totalorder %s18_s27, 4  }
 0x2dc   :  { %17 = sbr.rel (!%p15_p4) target bundleno = 1 (0x1), region = 83 }

</bundles_post_ra>
